<compile_context>
chip_gen: v7x
topology: tpu7x:2x2x1
jax: 0.10.0
libtpu: 0.0.40
codegen_flags: <defaults>
</compile_context>

<pallas_src>
import functools

import jax
import jax.numpy as jnp
from jax import lax
from jax.experimental import pallas as pl
from jax.experimental.pallas import tpu as pltpu

_EPS = 1e-12  # guards rsqrt for (padded / degenerate) all-zero constraint rows


# ----------------------------------------------------------------------------
# Pallas kernel: offset -> base coordinate transform + optional normalization
# ----------------------------------------------------------------------------
def _constraint_kernel(a_ref, b_ref, off_ref, out_ref, *, normalize, num_variables):
    A = a_ref[...]          # (tile, nv)  f32
    b = b_ref[...]          # (tile, 1)   f32
    off = off_ref[...]      # (tile, nv)  f32

    # A @ (y - offset) + b <= 0   ==>   A @ y + (b - A·offset) <= 0
    b_base = b - jnp.sum(A * off, axis=-1, keepdims=True)          # (tile, 1)

    if normalize:
        # unit-norm rows of A; divide the whole row [A_i | b_i] by ||A_i||_2.
        # rsqrt lowers to the EUP slot, keeping the divide off the VPU path.
        inv_norm = lax.rsqrt(jnp.sum(A * A, axis=-1, keepdims=True) + _EPS)
        A = A * inv_norm
        b_base = b_base * inv_norm

    out_ref[:, :num_variables] = A
    out_ref[:, num_variables:] = b_base


# ----------------------------------------------------------------------------
# Wrapper (plain-JAX glue: padding, tiling, pallas_call)
# ----------------------------------------------------------------------------
def static_constraint_forward(A, b, offsets, *, normalize_constraints=True):
    """Mirror of StaticConstraintModule.forward.

    A           : (num_constraints, num_variables) float32
    b           : (num_constraints,)               float32
    offsets     : (num_constraints, num_variables) float32
    returns     : (num_constraints, num_variables + 1) constraints [A | b_base]
    """
    A = jnp.asarray(A, jnp.float32)
    b = jnp.asarray(b, jnp.float32)
    offsets = jnp.asarray(offsets, jnp.float32)

    nc, nv = A.shape
    assert b.shape == (nc,) and offsets.shape == (nc, nv)

    # Pad rows to a sublane multiple of 8; bound the per-step row tile so huge
    # constraint sets don't blow past scoped VMEM (double-buffered inputs).
    nc8 = -(-nc // 8) * 8
    tile = min(nc8, 2048)
    nc_pad = -(-nc8 // tile) * tile
    pad = nc_pad - nc

    A_p = jnp.pad(A, ((0, pad), (0, 0)))
    off_p = jnp.pad(offsets, ((0, pad), (0, 0)))
    b_p = jnp.pad(b, ((0, pad),))[:, None]          # (nc_pad, 1): keep 2-D on TPU

    kernel = functools.partial(
        _constraint_kernel,
        normalize=bool(normalize_constraints),
        num_variables=nv)

    out = pl.pallas_call(
        kernel,
        out_shape=jax.ShapeDtypeStruct((nc_pad, nv + 1), jnp.float32),
        grid=(nc_pad // tile,),
        in_specs=[pl.BlockSpec((tile, nv), lambda i: (i, 0)),
                  pl.BlockSpec((tile, 1), lambda i: (i, 0)),
                  pl.BlockSpec((tile, nv), lambda i: (i, 0))],
        out_specs=pl.BlockSpec((tile, nv + 1), lambda i: (i, 0)),
        compiler_params=pltpu.CompilerParams(
            dimension_semantics=("parallel",)),
    )(A_p, b_p, off_p)

    return out[:nc] if pad else out


# ----------------------------------------------------------------------------
# Pure-JAX reference (for correctness check)
# ----------------------------------------------------------------------------
def _reference_forward(A, b, offsets, *, normalize_constraints=True):
    b_base = b - jnp.sum(A * offsets, axis=-1)
    cons = jnp.concatenate([A, b_base[:, None]], axis=-1)
    if normalize_constraints:
        inv = lax.rsqrt(jnp.sum(A * A, axis=-1, keepdims=True) + _EPS)
        cons = cons * inv
    return cons


# ----------------------------------------------------------------------------
# Demo
# ----------------------------------------------------------------------------
if __name__ == "__main__":
    key = jax.random.PRNGKey(0)
    num_constraints, num_variables = 8, 16
    variable_range = dict(lb=-5.0, ub=5.0)

    k1, k2, k3 = jax.random.split(key, 3)
    # Learnable parameters of the module (stand-ins for the sampled init).
    A = jax.random.normal(k1, (num_constraints, num_variables), jnp.float32)
    b = jax.random.normal(k2, (num_constraints,), jnp.float32)
    offsets = jax.random.uniform(
        k3, (num_constraints, num_variables), jnp.float32,
        minval=variable_range['lb'], maxval=variable_range['ub'])

    # normalize_constraints=True path
    out = static_constraint_forward(A, b, offsets, normalize_constraints=True)
    out = jax.block_until_ready(out)
    ref = _reference_forward(A, b, offsets, normalize_constraints=True)

    assert out.shape == (num_constraints, num_variables + 1)
    assert bool(jnp.all(jnp.isfinite(out)))
    assert bool(jnp.allclose(out, ref, atol=1e-5, rtol=1e-5))
    row_norms = jnp.sqrt(jnp.sum(out[:, :-1] ** 2, axis=-1))
    assert bool(jnp.allclose(row_norms, 1.0, atol=1e-4))

    # normalize_constraints=False path
    out2 = static_constraint_forward(A, b, offsets, normalize_constraints=False)
    out2 = jax.block_until_ready(out2)
    ref2 = _reference_forward(A, b, offsets, normalize_constraints=False)
    assert bool(jnp.allclose(out2, ref2, atol=1e-5, rtol=1e-5))

    print("KERNEL_OK")
</pallas_src>

<mosaic_0001>
module attributes {stable_mosaic.version = 11 : i64} {
  func.func @_constraint_kernel(%arg0: i32, %arg1: memref<8x16xf32, #tpu.memory_space<vmem>>, %arg2: memref<8x1xf32, #tpu.memory_space<vmem>>, %arg3: memref<8x16xf32, #tpu.memory_space<vmem>>, %arg4: memref<8x17xf32, #tpu.memory_space<vmem>>) attributes {dimension_semantics = [#tpu.dimension_semantics<parallel>], iteration_bounds = array<i64: 1>, scalar_prefetch = 0 : i64, scratch_operands = 0 : i64, tpu.core_type = #tpu.core_type<tc>, window_params = [{transform_indices = @transform_0, window_bounds = array<i64: 8, 16>}, {transform_indices = @transform_1, window_bounds = array<i64: 8, 1>}, {transform_indices = @transform_2, window_bounds = array<i64: 8, 16>}, {transform_indices = @transform_3, window_bounds = array<i64: 8, 17>}]} {
    %c0 = arith.constant 0 : index
    %c0_0 = arith.constant 0 : index
    %0 = vector.load %arg1[%c0, %c0_0] : memref<8x16xf32, #tpu.memory_space<vmem>>, vector<8x16xf32>
    %c0_1 = arith.constant 0 : index
    %c0_2 = arith.constant 0 : index
    %1 = vector.load %arg2[%c0_1, %c0_2] : memref<8x1xf32, #tpu.memory_space<vmem>>, vector<8x1xf32>
    %c0_3 = arith.constant 0 : index
    %c0_4 = arith.constant 0 : index
    %2 = vector.load %arg3[%c0_3, %c0_4] : memref<8x16xf32, #tpu.memory_space<vmem>>, vector<8x16xf32>
    %3 = arith.mulf %0, %2 : vector<8x16xf32>
    %cst = arith.constant dense<0.000000e+00> : vector<8xf32>
    %4 = vector.multi_reduction <add>, %3, %cst [1] : vector<8x16xf32> to vector<8xf32>
    %5 = vector.shape_cast %4 : vector<8xf32> to vector<8x1xf32>
    %6 = arith.subf %1, %5 : vector<8x1xf32>
    %7 = arith.mulf %0, %0 : vector<8x16xf32>
    %cst_5 = arith.constant dense<0.000000e+00> : vector<8xf32>
    %8 = vector.multi_reduction <add>, %7, %cst_5 [1] : vector<8x16xf32> to vector<8xf32>
    %9 = vector.shape_cast %8 : vector<8xf32> to vector<8x1xf32>
    %cst_6 = arith.constant 9.99999996E-13 : f32
    %10 = vector.broadcast %cst_6 : f32 to vector<8x1xf32>
    %11 = arith.addf %9, %10 : vector<8x1xf32>
    %12 = math.rsqrt %11 : vector<8x1xf32>
    %13 = vector.broadcast %12 : vector<8x1xf32> to vector<8x16xf32>
    %14 = arith.mulf %0, %13 : vector<8x16xf32>
    %15 = arith.mulf %6, %12 : vector<8x1xf32>
    %c0_7 = arith.constant 0 : index
    %c0_8 = arith.constant 0 : index
    %16 = vector.load %arg4[%c0_7, %c0_8] : memref<8x17xf32, #tpu.memory_space<vmem>>, vector<8x16xf32>
    tpu.vector_store %arg4[%c0_7, %c0_8], %14 {strides = array<i32>} : memref<8x17xf32, #tpu.memory_space<vmem>>, vector<8x16xf32>,
    %c0_9 = arith.constant 0 : index
    %c16 = arith.constant 16 : index
    %17 = vector.load %arg4[%c0_9, %c16] : memref<8x17xf32, #tpu.memory_space<vmem>>, vector<8x1xf32>
    tpu.vector_store %arg4[%c0_9, %c16], %15 {strides = array<i32>} : memref<8x17xf32, #tpu.memory_space<vmem>>, vector<8x1xf32>,
    return
  }
  func.func @transform_0(%arg0: i32) -> (i32, i32) {
    %c0_i32 = arith.constant 0 : i32
    %c0_i32_0 = arith.constant 0 : i32
    return %arg0, %c0_i32 : i32, i32
  }
  func.func @transform_1(%arg0: i32) -> (i32, i32) {
    %c0_i32 = arith.constant 0 : i32
    %c0_i32_0 = arith.constant 0 : i32
    return %arg0, %c0_i32 : i32, i32
  }
  func.func @transform_2(%arg0: i32) -> (i32, i32) {
    %c0_i32 = arith.constant 0 : i32
    %c0_i32_0 = arith.constant 0 : i32
    return %arg0, %c0_i32 : i32, i32
  }
  func.func @transform_3(%arg0: i32) -> (i32, i32) {
    %c0_i32 = arith.constant 0 : i32
    %c0_i32_0 = arith.constant 0 : i32
    return %arg0, %c0_i32 : i32, i32
  }
}

</mosaic_0001>

<bundles_post_ra>
// kernel: tpu_custom_call.1
= control target key start
LH: loop header
LB: loop body
LE: loop exit
PB: predicated region body
PF: predicated region fallthrough
CT: control target
= control target key end

     0   :  { %vm19_vm0 = vcmask 130048   ;;  %s127_s0 = inlined_call_operand.vmem [shape: f32[8,16], index: 0, kind: input, shape index: {}]   ;;  %s128_s1 = inlined_call_operand.vmem [shape: f32[8,1], index: 1, kind: input, shape index: {}]   ;;  %s129_s2 = inlined_call_operand.vmem [shape: f32[8,16], index: 2, kind: input, shape index: {}]   ;;  %s130_s3 = inlined_call_operand.hbm [shape: f32[8,17], index: 3, kind: output, shape index: {}]  }
   0x1   :  { %v15_v0 = vld [vmem:[%s127_s0] sm:$0xff] }
   0x2   :  { %v17_v1 = vld [vmem:[%s129_s2] sm:$0xff] }
   0x3   :  { %8 = vsyncpa [#allocation3], 0  ;;  %v24_v2 = vmul.f32 %v15_v0, %v15_v0  ;;  %v18_v3 = vmul.f32 %v17_v1, %v15_v0  ;;  %v16_v8 = vld [vmem:[%s128_s1] sm:$0xff]  ;;  %s81_s0 = smov 16   ;;  %s82_s2 = smov [#allocation2]   ;;  %vm37_vm1 = vcmask 138368  }
   0x4   :  { %s45_s18 = sshll.u32 %s82_s2, 4  ;;  %s46_s18 = int_to_ptr.vmem [resolvable:$true] %s45_s18 }
   0x5   :  { %v25_v4 = vsel %vm19_vm0, %v24_v2, 0.0  ;;  %v20_v5 = vsel %vm19_vm0, %v18_v3, 0.0  ;;  %s57_s19 = scalar_lea.vmem %s46_s18, 128  ;;  %p62_p1 = scmp.lt.s32.totalorder %s46_s18, %s46_s18 }
   0x6   :  { %26 = vadd.xlane.f32.xlu0 %v25_v4  ;;  %p58_p0 = scmp.ne.s32.totalorder %s46_s18, %s57_s19  ;;  %p63_p2 = scmp.lt.s32.totalorder %s57_s19, %s57_s19 }
   0x8   :  { %p64_p3 = por %p63_p2, %p62_p1 }
   0xa   :  { %21 = vadd.xlane.f32.xlu0 %v20_v5  ;;  %p65_p4 = pnand %p64_p3, %p58_p0 }
  0x93   :  { %v27_v6 = vpop.xlane.xlu0 %26 }
  0x94   :  { %v28_v7 = vadd.f32 1e-12, %v27_v6 }
  0x96   :  { %55 = vrsqrt.f32 %v28_v7 }
  0x97   :  { %v22_v9 = vpop.xlane.xlu0 %21 }
  0x98   :  { %v23_v10 = vsub.f32 %v16_v8, %v22_v9 }
  0xa0   :  { %v56_v11 = vpop.eup %55 }
  0xa1   :  { %v31_v12 = vmul.f32 %v56_v11, %v23_v10  ;;  %v30_v13 = vmul.f32 %v56_v11, %v15_v0 }
  0xa3   :  { %34 = vrot.lane.b32.xlu1 %v31_v12, %s81_s0  ;;  %32 = vst.msk [vmem:[#allocation2] sm:$0xff] %vm19_vm0, %v30_v13 }
 0x115   :  { %v35_v14 = vpop.permute.xlu1 %34 }
 0x116   :  { %38 = vst.msk [vmem:[#allocation2] sm:$0xff] %vm37_vm1, %v35_v14 }
 0x117   :  { %68 = shalt.err (!%p65_p4)
}
 0x118   :  { %s69_s21 = scalar_lea.hbm %s130_s3, 128 }
 0x119   :  { %p70_p5 = scmp.ne.s32.totalorder %s130_s3, %s69_s21  ;;  %p73_p6 = scmp.lt.u32.totalorder %s69_s21, %s130_s3 }
 0x11b   :  { %p75_p7 = pnand %p73_p6, %p70_p5 }
 0x11d   :  { %78 = shalt.err (!%p75_p7)
}
 0x11e   :  { %48 = dma.vmem_to_hbm [thread:$0]  %s46_s18, 128, %s130_s3, [#allocation3]  }
 0x11f   :  { %79 = dma.done.wait [#allocation3], 128  }
 0x120   :  { %80 = vsyncadd [#allocation3], 4294967168 }
 0x121   :  { %52 = vsyncpa [#allocation3], 1 }

</bundles_post_ra>
